<compile_context>
chip_gen: v5e
topology: v5e:2x2
jax: 0.10.0
libtpu: 0.0.40
codegen_flags: <defaults>
</compile_context>

<pallas_src>
import functools

import jax
import jax.numpy as jnp
from jax.experimental import pallas as pl
from jax.experimental.pallas import tpu as pltpu


def _round_up(v, m):
    return ((v + m - 1) // m) * m


def _pick_tile(padded, align, cap):
    """Largest multiple of `align` that divides `padded` and is <= cap."""
    if padded <= cap:
        return padded
    best = align
    t = align
    while t <= cap:
        if padded % t == 0:
            best = t
        t += align
    return best


def _rbf_cross_kernel(x_ref, pt_ref, xsq_ref, psq_ref, o_ref, *, neg_inv_two_sigma2):
    """One (tm, tn) output tile; reduction over the feature axis is grid axis 2.

    x_ref:   [tm, tk]  batch tile, feature chunk
    pt_ref:  [tk, tn]  pre-transposed prototype tile (no in-kernel transpose)
    xsq_ref: [tm, 1]   hoisted ||x||^2
    psq_ref: [1,  tn]  hoisted ||p||^2
    o_ref:   [tm, tn]  f32 output tile, doubles as the cross-term accumulator
    """
    k = pl.program_id(2)

    @pl.when(k == 0)
    def _():
        o_ref[...] = jnp.zeros_like(o_ref)

    # Pure MXU matmul-accumulate in the inner (reduction) loop.
    o_ref[...] += jnp.dot(x_ref[...], pt_ref[...], preferred_element_type=jnp.float32)

    @pl.when(k == pl.num_programs(2) - 1)
    def _():
        # ||x-p||^2 = ||x||^2 + ||p||^2 - 2 x.p ; clamp guards Gram-form cancellation.
        sqdist = jnp.maximum(xsq_ref[...] + psq_ref[...] - 2.0 * o_ref[...], 0.0)
        o_ref[...] = jnp.exp(sqdist * neg_inv_two_sigma2)


def kernel_layer_forward(x, prototypes, sigma, *,
                         matmul_dtype=jnp.float32,
                         max_tm=512, max_tn=512, max_tk=2048,
                         prefer_pallas=None):
    """JAX/Pallas equivalent of Kernel_Layer.forward.

    Args:
      x:            [batch, n_features] float
      prototypes:   [num_prototypes, n_features] float
      sigma:        python float (compile-time constant)
      matmul_dtype: dtype for the cross-term matmul operands. jnp.bfloat16 is the
                    throughput path on bf16-native MXUs (v6e/v7x); accumulation and
                    the norm terms stay f32 either way.
      prefer_pallas: force (True) / bypass (False) the Pallas kernel; None = heuristic.
    Returns:
      [batch, num_prototypes] float32
    """
    assert x.shape[1] == prototypes.shape[1]
    B, F = x.shape
    P, _ = prototypes.shape

    x = x.astype(jnp.float32)
    prototypes = prototypes.astype(jnp.float32)

    if prefer_pallas is None:
        # Tiny problems: launch overhead + lane padding (P < 128) dominate -> fused XLA.
        prefer_pallas = (2 * B * P * F >= (1 << 22)) and P >= 64
    if not prefer_pallas:
        sq = jnp.sum((x[:, None, :] - prototypes[None, :, :]) ** 2, axis=-1)
        return jnp.exp(-sq / (2.0 * float(sigma) * float(sigma)))

    # Pad: sublane (batch) to 8, lane dims to 128. Padded feature columns are zero
    # (contribute nothing); padded batch/prototype rows are sliced off at the end.
    Bp, Pp, Fp = _round_up(B, 8), _round_up(P, 128), _round_up(F, 128)
    if (Bp, Fp) != (B, F):
        x = jnp.pad(x, ((0, Bp - B), (0, Fp - F)))
    if (Pp, Fp) != (P, F):
        prototypes = jnp.pad(prototypes, ((0, Pp - P), (0, Fp - F)))

    # Hoisted norm terms: computed once, in f32, outside the reduction loop.
    x_sq = jnp.sum(x * x, axis=1, keepdims=True)                    # [Bp, 1]
    p_sq = jnp.sum(prototypes * prototypes, axis=1)[None, :]        # [1, Pp]

    # Pre-transposed prototypes so the kernel's dot needs no transpose.
    proto_t = prototypes.T                                          # [Fp, Pp]

    if jnp.dtype(matmul_dtype) != jnp.dtype(jnp.float32):
        x_mm = x.astype(matmul_dtype)
        proto_t = proto_t.astype(matmul_dtype)
    else:
        x_mm = x

    # Largest aligned tiles that divide the padded dims (no extra rounding padding);
    # tk == Fp whenever it fits -> single-step reduction.
    tm = _pick_tile(Bp, 8, max_tm)
    tn = _pick_tile(Pp, 128, max_tn)
    tk = _pick_tile(Fp, 128, max_tk)

    # If the whole problem would be one (i, j) tile and the work is non-trivial, split
    # the P (or B) axis so >= 2 parallel tiles exist (keeps both TensorCores busy on
    # dual-core chips such as v7x; harmless on single-core chips).
    if (Bp // tm) * (Pp // tn) == 1 and Bp * Pp * Fp >= (1 << 23):
        tn2 = _pick_tile(Pp, 128, max(Pp // 2, 128))
        if Pp // tn2 >= 2:
            tn = tn2
        else:
            tm2 = _pick_tile(Bp, 8, max(Bp // 2, 8))
            if Bp // tm2 >= 2:
                tm = tm2

    neg_inv_two_sigma2 = -1.0 / (2.0 * float(sigma) * float(sigma))
    kernel = functools.partial(_rbf_cross_kernel, neg_inv_two_sigma2=neg_inv_two_sigma2)

    in_bytes = jnp.dtype(matmul_dtype).itemsize
    # Double-buffered x / prototype tiles + resident f32 output tile + norm vectors.
    vmem_bytes = (2 * (tm * tk + tk * tn) * in_bytes
                  + 2 * tm * tn * 4
                  + 2 * (tm + tn) * 4)
    vmem_limit = min(max(int(vmem_bytes * 1.5), 32 * 1024 * 1024), 64 * 1024 * 1024)

    cost = pl.CostEstimate(
        flops=2 * Bp * Pp * Fp,
        transcendentals=Bp * Pp,
        bytes_accessed=(Bp * Fp + Fp * Pp) * in_bytes + Bp * Pp * 4 + (Bp + Pp) * 4,
    )

    out = pl.pallas_call(
        kernel,
        out_shape=jax.ShapeDtypeStruct((Bp, Pp), jnp.float32),
        grid_spec=pltpu.PrefetchScalarGridSpec(
            num_scalar_prefetch=0,
            grid=(Bp // tm, Pp // tn, Fp // tk),
            in_specs=[
                pl.BlockSpec((tm, tk), lambda i, j, k: (i, k)),   # x tile
                pl.BlockSpec((tk, tn), lambda i, j, k: (k, j)),   # prototypes^T tile
                pl.BlockSpec((tm, 1), lambda i, j, k: (i, 0)),    # ||x||^2 tile
                pl.BlockSpec((1, tn), lambda i, j, k: (0, j)),    # ||p||^2 tile
            ],
            out_specs=pl.BlockSpec((tm, tn), lambda i, j, k: (i, j)),
        ),
        compiler_params=pltpu.CompilerParams(
            dimension_semantics=("parallel", "parallel", "arbitrary"),
            vmem_limit_bytes=vmem_limit,
        ),
        cost_estimate=cost,
    )(x_mm, proto_t, x_sq, p_sq)

    return out[:B, :P]


if __name__ == "__main__":
    def reference(x, protos, sig):
        d2 = jnp.sum((x[:, None, :] - protos[None, :, :]) ** 2, axis=-1)
        return jnp.exp(-d2 / (2.0 * sig * sig))

    # Small, deterministic shapes consistent with the module:
    #   x: [batch_size, n_features], prototypes: [hidden_dim, n_features]
    batch_size, n_features, hidden_dim = 32, 64, 16
    sigma = float(n_features) ** 0.5   # keep exponents O(1) so the check is meaningful

    key = jax.random.PRNGKey(0)
    kx, kp = jax.random.split(key)
    x = jax.random.normal(kx, (batch_size, n_features), dtype=jnp.float32)
    # TODO(synk): the module initializes prototypes via k-means over training data in
    # reset_parameters(); a PRNG init is used here instead (init-time only, does not
    # affect forward math).
    prototypes = jax.random.normal(kp, (hidden_dim, n_features), dtype=jnp.float32)

    out = kernel_layer_forward(x, prototypes, sigma, prefer_pallas=True)
    out = jax.block_until_ready(out)
    ref = reference(x, prototypes, sigma)
    assert out.shape == (batch_size, hidden_dim)
    assert jnp.allclose(out, ref, atol=1e-4, rtol=1e-4), float(jnp.max(jnp.abs(out - ref)))

    # Larger (still small) case exercising multi-tile grid, odd-size padding,
    # and the bf16 MXU path.
    B2, F2, P2 = 300, 384, 200
    sigma2 = float(F2) ** 0.5
    k2x, k2p = jax.random.split(jax.random.PRNGKey(1))
    x2 = jax.random.normal(k2x, (B2, F2), dtype=jnp.float32)
    p2 = jax.random.normal(k2p, (P2, F2), dtype=jnp.float32)
    ref2 = reference(x2, p2, sigma2)

    out2 = jax.block_until_ready(kernel_layer_forward(x2, p2, sigma2, prefer_pallas=True))
    assert out2.shape == (B2, P2)
    assert jnp.allclose(out2, ref2, atol=1e-4, rtol=1e-4), float(jnp.max(jnp.abs(out2 - ref2)))

    out2_bf16 = jax.block_until_ready(
        kernel_layer_forward(x2, p2, sigma2, matmul_dtype=jnp.bfloat16, prefer_pallas=True))
    assert jnp.allclose(out2_bf16, ref2, atol=3e-2, rtol=3e-2), float(
        jnp.max(jnp.abs(out2_bf16 - ref2)))

    print("KERNEL_OK")
</pallas_src>

<mosaic_0001>
module attributes {stable_mosaic.version = 11 : i64} {
  func.func @_rbf_cross_kernel(%arg0: i32, %arg1: i32, %arg2: i32, %arg3: memref<32x128xf32, #tpu.memory_space<vmem>>, %arg4: memref<128x128xf32, #tpu.memory_space<vmem>>, %arg5: memref<32x1xf32, #tpu.memory_space<vmem>>, %arg6: memref<1x128xf32, #tpu.memory_space<vmem>>, %arg7: memref<32x128xf32, #tpu.memory_space<vmem>>) attributes {dimension_semantics = [#tpu.dimension_semantics<parallel>, #tpu.dimension_semantics<parallel>, #tpu.dimension_semantics<arbitrary>], iteration_bounds = array<i64: 1, 1, 1>, scalar_prefetch = 0 : i64, scratch_operands = 0 : i64, tpu.core_type = #tpu.core_type<tc>, window_params = [{transform_indices = @transform_0, window_bounds = array<i64: 32, 128>}, {transform_indices = @transform_1, window_bounds = array<i64: 128, 128>}, {transform_indices = @transform_2, window_bounds = array<i64: 32, 1>}, {transform_indices = @transform_3, window_bounds = array<i64: 1, 128>}, {transform_indices = @transform_4, window_bounds = array<i64: 32, 128>}]} {
    %c0_i32 = arith.constant 0 : i32
    %0 = arith.cmpi eq, %arg2, %c0_i32 : i32
    %1 = arith.extui %0 : i1 to i32
    %c0_i32_0 = arith.constant 0 : i32
    %2 = arith.cmpi ne, %1, %c0_i32_0 : i32
    scf.if %2 {
      %cst_10 = arith.constant 0.000000e+00 : f32
      %12 = vector.broadcast %cst_10 : f32 to vector<32x128xf32>
      %c0_11 = arith.constant 0 : index
      %c0_12 = arith.constant 0 : index
      %13 = vector.load %arg7[%c0_11, %c0_12] : memref<32x128xf32, #tpu.memory_space<vmem>>, vector<32x128xf32>
      tpu.vector_store %arg7[%c0_11, %c0_12], %12 {strides = array<i32>} : memref<32x128xf32, #tpu.memory_space<vmem>>, vector<32x128xf32>,
    } else {
    }
    %c0 = arith.constant 0 : index
    %c0_1 = arith.constant 0 : index
    %3 = vector.load %arg7[%c0, %c0_1] : memref<32x128xf32, #tpu.memory_space<vmem>>, vector<32x128xf32>
    %c0_2 = arith.constant 0 : index
    %c0_3 = arith.constant 0 : index
    %4 = vector.load %arg3[%c0_2, %c0_3] : memref<32x128xf32, #tpu.memory_space<vmem>>, vector<32x128xf32>
    %c0_4 = arith.constant 0 : index
    %c0_5 = arith.constant 0 : index
    %5 = vector.load %arg4[%c0_4, %c0_5] : memref<128x128xf32, #tpu.memory_space<vmem>>, vector<128x128xf32>
    %cst = arith.constant dense<0.000000e+00> : vector<32x128xf32>
    %6 = tpu.matmul %4, %5, %cst {dimension_numbers = #tpu.dot_dimension_numbers<[1], [0], [0], [1], [0, 0, 1, 1], [], []>} : vector<32x128xf32>, vector<128x128xf32>, vector<32x128xf32> -> vector<32x128xf32>
    %7 = arith.addf %3, %6 : vector<32x128xf32>
    %c0_6 = arith.constant 0 : index
    %c0_7 = arith.constant 0 : index
    %8 = vector.load %arg7[%c0_6, %c0_7] : memref<32x128xf32, #tpu.memory_space<vmem>>, vector<32x128xf32>
    tpu.vector_store %arg7[%c0_6, %c0_7], %7 {strides = array<i32>} : memref<32x128xf32, #tpu.memory_space<vmem>>, vector<32x128xf32>,
    %c0_i32_8 = arith.constant 0 : i32
    %9 = arith.cmpi eq, %arg2, %c0_i32_8 : i32
    %10 = arith.extui %9 : i1 to i32
    %c0_i32_9 = arith.constant 0 : i32
    %11 = arith.cmpi ne, %10, %c0_i32_9 : i32
    scf.if %11 {
      %c0_10 = arith.constant 0 : index
      %c0_11 = arith.constant 0 : index
      %12 = vector.load %arg5[%c0_10, %c0_11] : memref<32x1xf32, #tpu.memory_space<vmem>>, vector<32x1xf32>
      %c0_12 = arith.constant 0 : index
      %c0_13 = arith.constant 0 : index
      %13 = vector.load %arg6[%c0_12, %c0_13] : memref<1x128xf32, #tpu.memory_space<vmem>>, vector<1x128xf32>
      %14 = vector.broadcast %12 : vector<32x1xf32> to vector<32x128xf32>
      %15 = vector.broadcast %13 : vector<1x128xf32> to vector<32x128xf32>
      %16 = arith.addf %14, %15 : vector<32x128xf32>
      %c0_14 = arith.constant 0 : index
      %c0_15 = arith.constant 0 : index
      %17 = vector.load %arg7[%c0_14, %c0_15] : memref<32x128xf32, #tpu.memory_space<vmem>>, vector<32x128xf32>
      %cst_16 = arith.constant 2.000000e+00 : f32
      %18 = vector.broadcast %cst_16 : f32 to vector<32x128xf32>
      %19 = arith.mulf %18, %17 : vector<32x128xf32>
      %20 = arith.subf %16, %19 : vector<32x128xf32>
      %cst_17 = arith.constant 0.000000e+00 : f32
      %21 = vector.broadcast %cst_17 : f32 to vector<32x128xf32>
      %22 = arith.maximumf %20, %21 : vector<32x128xf32>
      %cst_18 = arith.constant -7.812500e-03 : f32
      %23 = vector.broadcast %cst_18 : f32 to vector<32x128xf32>
      %24 = arith.mulf %22, %23 : vector<32x128xf32>
      %25 = math.exp %24 : vector<32x128xf32>
      %c0_19 = arith.constant 0 : index
      %c0_20 = arith.constant 0 : index
      %26 = vector.load %arg7[%c0_19, %c0_20] : memref<32x128xf32, #tpu.memory_space<vmem>>, vector<32x128xf32>
      tpu.vector_store %arg7[%c0_19, %c0_20], %25 {strides = array<i32>} : memref<32x128xf32, #tpu.memory_space<vmem>>, vector<32x128xf32>,
    } else {
    }
    return
  }
  func.func @transform_0(%arg0: i32, %arg1: i32, %arg2: i32) -> (i32, i32) {
    %c0_i32 = arith.constant 0 : i32
    return %arg0, %arg2 : i32, i32
  }
  func.func @transform_1(%arg0: i32, %arg1: i32, %arg2: i32) -> (i32, i32) {
    %c0_i32 = arith.constant 0 : i32
    return %arg2, %arg1 : i32, i32
  }
  func.func @transform_2(%arg0: i32, %arg1: i32, %arg2: i32) -> (i32, i32) {
    %c0_i32 = arith.constant 0 : i32
    %c0_i32_0 = arith.constant 0 : i32
    return %arg0, %c0_i32 : i32, i32
  }
  func.func @transform_3(%arg0: i32, %arg1: i32, %arg2: i32) -> (i32, i32) {
    %c0_i32 = arith.constant 0 : i32
    %c0_i32_0 = arith.constant 0 : i32
    return %c0_i32, %arg1 : i32, i32
  }
  func.func @transform_4(%arg0: i32, %arg1: i32, %arg2: i32) -> (i32, i32) {
    %c0_i32 = arith.constant 0 : i32
    return %arg0, %arg1 : i32, i32
  }
}

</mosaic_0001>

<bundles_post_ra>
// kernel: tpu_custom_call.1
= control target key start
LH: loop header
LB: loop body
LE: loop exit
PB: predicated region body
PF: predicated region fallthrough
CT: control target
= control target key end

     0   :  { %9 = vsyncpa [#allocation3], 0  ;;  %s375_s0 = inlined_call_operand.vmem [shape: f32[32,128], index: 0, kind: input, shape index: {}]   ;;  %s376_s1 = inlined_call_operand.hbm [shape: f32[128,128], index: 1, kind: input, shape index: {}]   ;;  %s377_s2 = inlined_call_operand.vmem [shape: f32[32,1], index: 2, kind: input, shape index: {}]   ;;  %s378_s3 = inlined_call_operand.vmem [shape: f32[1,128], index: 3, kind: input, shape index: {}]   ;;  %s379_s4 = inlined_call_operand.hbm [shape: f32[32,128], index: 4, kind: output, shape index: {}]  }
   0x1   :  { %10 = vsyncpa [#allocation4], 0  ;;  %s17_s17 = sshll.u32 %s376_s1, 4  ;;  %s306_s18 = smov [#allocation2]   ;;  %s18_s17 = int_to_ptr.hbm [resolvable:$true] %s17_s17 }
   0x2   :  { %s19_s19 = sshll.u32 %s306_s18, 4  ;;  %s307_s20 = smov 128   ;;  %s20_s19 = int_to_ptr.vmem [resolvable:$true] %s19_s19 }
   0x3   :  { %s308_s21 = smov 8  }
   0x4   :  { %25 = dma.hbm_to_vmem [thread:$0]  %s18_s17, 2048, %s20_s19, [#allocation3], %s307_s20, %s307_s20, %s308_s21  }
   0x5   :  { %302 = dma.done.wait [#allocation3], 2048  }
   0x6   :  { %303 = vsyncadd [#allocation3], 4294965248  ;;  %v65_v0 = vld [vmem:[#allocation2 + $0x78] sm:$0xff]  ;;  %v64_v1 = vld [vmem:[#allocation2 + $0x70] sm:$0xff]  ;;  %v309_v22 = vmov 0   ;;  %s176_s14 = sshll.u32 %s379_s4, 4  ;;  %s177_s14 = int_to_ptr.hbm [resolvable:$true] %s176_s14 }
   0x7   :  { %66 = vmatpush.msra.mxu0 %v65_v0  ;;  %189 = vmatpush.msra.mxu1 %v65_v0  ;;  %v63_v2 = vld [vmem:[#allocation2 + $0x68] sm:$0xff]  ;;  %v62_v3 = vld [vmem:[#allocation2 + $0x60] sm:$0xff]  ;;  %v61_v4 = vld [vmem:[#allocation2 + $0x58] sm:$0xff] }
   0x8   :  { %190 = vmatpush.msra.mxu2 %v65_v0  ;;  %191 = vmatpush.msra.mxu3 %v65_v0  ;;  %v60_v5 = vld [vmem:[#allocation2 + $0x50] sm:$0xff]  ;;  %v59_v6 = vld [vmem:[#allocation2 + $0x48] sm:$0xff]  ;;  %v58_v7 = vld [vmem:[#allocation2 + $0x40] sm:$0xff] }
   0x9   :  { %67 = vmatpush.msra.mxu0 %v64_v1  ;;  %192 = vmatpush.msra.mxu1 %v64_v1  ;;  %v57_v8 = vld [vmem:[#allocation2 + $0x38] sm:$0xff]  ;;  %v56_v9 = vld [vmem:[#allocation2 + $0x30] sm:$0xff]  ;;  %v55_v10 = vld [vmem:[#allocation2 + $0x28] sm:$0xff] }
   0xa   :  { %193 = vmatpush.msra.mxu2 %v64_v1  ;;  %194 = vmatpush.msra.mxu3 %v64_v1  ;;  %v54_v11 = vld [vmem:[#allocation2 + $0x20] sm:$0xff]  ;;  %v53_v12 = vld [vmem:[#allocation2 + $0x18] sm:$0xff]  ;;  %v52_v13 = vld [vmem:[#allocation2 + $0x10] sm:$0xff] }
   0xb   :  { %68 = vmatpush.msra.mxu0 %v63_v2  ;;  %195 = vmatpush.msra.mxu1 %v63_v2  ;;  %v51_v14 = vld [vmem:[#allocation2 + $0x8] sm:$0xff]  ;;  %v50_v15 = vld [vmem:[#allocation2] sm:$0xff]  ;;  %v48_v18 = vld [vmem:[%s375_s0 + $0x10] sm:$0xff] }
   0xc   :  { %196 = vmatpush.msra.mxu2 %v63_v2  ;;  %197 = vmatpush.msra.mxu3 %v63_v2  ;;  %v46_v16 = vld [vmem:[%s375_s0] sm:$0xff]  ;;  %v47_v17 = vld [vmem:[%s375_s0 + $0x8] sm:$0xff]  ;;  %v49_v19 = vld [vmem:[%s375_s0 + $0x18] sm:$0xff] }
   0xd   :  { %69 = vmatpush.msra.mxu0 %v62_v3  ;;  %198 = vmatpush.msra.mxu1 %v62_v3  ;;  %v108_v20 = vld [vmem:[%s377_s2 + $0x10] sm:$0xff]  ;;  %v106_v21 = vld [vmem:[%s377_s2] sm:$0xff]  ;;  %v109_v23 = vld [vmem:[%s377_s2 + $0x18] sm:$0xff] }
   0xe   :  { %199 = vmatpush.msra.mxu2 %v62_v3  ;;  %200 = vmatpush.msra.mxu3 %v62_v3  ;;  %v107_v24 = vld [vmem:[%s377_s2 + $0x8] sm:$0xff]  ;;  %v245_v27 = vld [vmem:[%s378_s3] ss:$0 sm:$0xff]  ;;  %s310_s2 = smov [#allocation5]  }
   0xf   :  { %70 = vmatpush.msra.mxu0 %v61_v4  ;;  %201 = vmatpush.msra.mxu1 %v61_v4  ;;  %s174_s3 = sshll.u32 %s310_s2, 4  ;;  %s175_s3 = int_to_ptr.vmem [resolvable:$true] %s174_s3 }
  0x10   :  { %202 = vmatpush.msra.mxu2 %v61_v4  ;;  %203 = vmatpush.msra.mxu3 %v61_v4 }
  0x11   :  { %71 = vmatpush.msra.mxu0 %v60_v5  ;;  %204 = vmatpush.msra.mxu1 %v60_v5 }
  0x12   :  { %205 = vmatpush.msra.mxu2 %v60_v5  ;;  %206 = vmatpush.msra.mxu3 %v60_v5 }
  0x13   :  { %72 = vmatpush.msra.mxu0 %v59_v6  ;;  %207 = vmatpush.msra.mxu1 %v59_v6 }
  0x14   :  { %208 = vmatpush.msra.mxu2 %v59_v6  ;;  %209 = vmatpush.msra.mxu3 %v59_v6 }
  0x15   :  { %73 = vmatpush.msra.mxu0 %v58_v7  ;;  %210 = vmatpush.msra.mxu1 %v58_v7 }
  0x16   :  { %211 = vmatpush.msra.mxu2 %v58_v7  ;;  %212 = vmatpush.msra.mxu3 %v58_v7 }
  0x17   :  { %74 = vmatpush.msra.mxu0 %v57_v8  ;;  %213 = vmatpush.msra.mxu1 %v57_v8 }
  0x18   :  { %214 = vmatpush.msra.mxu2 %v57_v8  ;;  %215 = vmatpush.msra.mxu3 %v57_v8 }
  0x19   :  { %75 = vmatpush.msra.mxu0 %v56_v9  ;;  %216 = vmatpush.msra.mxu1 %v56_v9 }
  0x1a   :  { %217 = vmatpush.msra.mxu2 %v56_v9  ;;  %218 = vmatpush.msra.mxu3 %v56_v9 }
  0x1b   :  { %76 = vmatpush.msra.mxu0 %v55_v10  ;;  %219 = vmatpush.msra.mxu1 %v55_v10 }
  0x1c   :  { %220 = vmatpush.msra.mxu2 %v55_v10  ;;  %221 = vmatpush.msra.mxu3 %v55_v10 }
  0x1d   :  { %77 = vmatpush.msra.mxu0 %v54_v11  ;;  %222 = vmatpush.msra.mxu1 %v54_v11 }
  0x1e   :  { %223 = vmatpush.msra.mxu2 %v54_v11  ;;  %224 = vmatpush.msra.mxu3 %v54_v11 }
  0x1f   :  { %78 = vmatpush.msra.mxu0 %v53_v12  ;;  %225 = vmatpush.msra.mxu1 %v53_v12 }
  0x20   :  { %226 = vmatpush.msra.mxu2 %v53_v12  ;;  %227 = vmatpush.msra.mxu3 %v53_v12 }
  0x21   :  { %79 = vmatpush.msra.mxu0 %v52_v13  ;;  %228 = vmatpush.msra.mxu1 %v52_v13 }
  0x22   :  { %229 = vmatpush.msra.mxu2 %v52_v13  ;;  %230 = vmatpush.msra.mxu3 %v52_v13 }
  0x23   :  { %80 = vmatpush.msra.mxu0 %v51_v14  ;;  %231 = vmatpush.msra.mxu1 %v51_v14 }
  0x24   :  { %232 = vmatpush.msra.mxu2 %v51_v14  ;;  %233 = vmatpush.msra.mxu3 %v51_v14 }
  0x25   :  { %81 = vmatpush.msra.mxu0 %v50_v15  ;;  %234 = vmatpush.msra.mxu1 %v50_v15 }
  0x26   :  { %235 = vmatpush.msra.mxu2 %v50_v15  ;;  %236 = vmatpush.msra.mxu3 %v50_v15 }
  0x27   :  { %82 = vmatmul.f32.vlgmr.msra.gmra.mxu0 %v46_v16  ;;  %85 = vmatmul.f32.vlgmr.msra.gmra.mxu1 %v47_v17 }
  0x28   :  { %88 = vmatmul.f32.vlgmr.msra.gmra.mxu2 %v48_v18  ;;  %91 = vmatmul.f32.vlgmr.msra.gmra.mxu3 %v49_v19 }
  0x29   :  { %244 = vset.pattern.permute.xlu1 %v309_v22  ;;  %243 = vset.pattern.permute.xlu0 %v309_v22 }
  0x2a   :  { %123 = vperm.xlu1 %244, %v108_v20   ;;  %113 = vperm.xlu0 %243, %v106_v21  }
  0x32   :  { %128 = vperm.xlu1 %244, %v109_v23   ;;  %118 = vperm.xlu0 %243, %v107_v24  }
  0x9c   :  { %v114_v25 = vpop.permute.xlu0 %113  ;;  %v124_v26 = vpop.permute.xlu1 %123 }
  0x9d   :  { %v134_v31 = vadd.f32 %v245_v27, %v114_v25  ;;  %v136_v44 = vadd.f32 %v245_v27, %v124_v26 }
  0xa4   :  { %v83_v28 = vpop.f32.mrf.mxu0  ;;  %v86_v29 = vpop.f32.mrf.mxu1 }
  0xa5   :  { %v119_v30 = vpop.permute.xlu0 %118  ;;  %v142_v32 = vmul.f32 2.0, %v83_v28  ;;  %v143_v34 = vmul.f32 2.0, %v86_v29  ;;  %v129_v37 = vpop.permute.xlu1 %128 }
  0xa6   :  { %v135_v33 = vadd.f32 %v245_v27, %v119_v30  ;;  %v137_v46 = vadd.f32 %v245_v27, %v129_v37 }
  0xa7   :  { %v146_v35 = vsub.f32 %v134_v31, %v142_v32 }
  0xa8   :  { %v147_v36 = vsub.f32 %v135_v33, %v143_v34 }
  0xa9   :  { %v150_v38 = vmax.f32 %v146_v35, 0.0 }
  0xaa   :  { %v151_v41 = vmax.f32 %v147_v36, 0.0 }
  0xab   :  { %v89_v39 = vpop.f32.mrf.mxu2  ;;  %v92_v40 = vpop.f32.mrf.mxu3  ;;  %v154_v42 = vmul.f32 -0.0078125, %v150_v38 }
  0xac   :  { %v155_v43 = vmul.f32 -0.0078125, %v151_v41  ;;  %v144_v45 = vmul.f32 2.0, %v89_v39  ;;  %v145_v47 = vmul.f32 2.0, %v92_v40 }
  0xad   :  { %v158_v48 = vmul.f32 1.442695, %v154_v42 }
  0xae   :  { %v160_v49 = vmul.f32 1.442695, %v155_v43  ;;  %v148_v50 = vsub.f32 %v136_v44, %v144_v45  ;;  %v149_v51 = vsub.f32 %v137_v46, %v145_v47 }
  0xaf   :  { %246 = vpow2.f32 %v158_v48 }
  0xb0   :  { %v152_v52 = vmax.f32 %v148_v50, 0.0  ;;  %v153_v53 = vmax.f32 %v149_v51, 0.0  ;;  %248 = vpow2.f32 %v160_v49 }
  0xb2   :  { %v156_v54 = vmul.f32 -0.0078125, %v152_v52  ;;  %v157_v55 = vmul.f32 -0.0078125, %v153_v53 }
  0xb4   :  { %v162_v56 = vmul.f32 1.442695, %v156_v54  ;;  %v164_v57 = vmul.f32 1.442695, %v157_v55 }
  0xb5   :  { %v247_v58 = vpop.eup %246 }
  0xb6   :  { %v249_v59 = vpop.eup %248  ;;  %166 = vst [vmem:[#allocation5] sm:$0xff] %v247_v58  ;;  %250 = vpow2.f32 %v162_v56 }
  0xb7   :  { %252 = vpow2.f32 %v164_v57  ;;  %167 = vst [vmem:[#allocation5 + $0x8] sm:$0xff] %v249_v59 }
  0xbc   :  { %v251_v60 = vpop.eup %250 }
  0xbd   :  { %v253_v61 = vpop.eup %252  ;;  %168 = vst [vmem:[#allocation5 + $0x10] sm:$0xff] %v251_v60 }
  0xbe   :  { %169 = vst [vmem:[#allocation5 + $0x18] sm:$0xff] %v253_v61 }
  0xbf   :  { %182 = dma.vmem_to_hbm [thread:$0]  %s175_s3, 512, %s177_s14, [#allocation4], %s307_s20, %s307_s20, %s308_s21  }
  0xc0   :  { %304 = dma.done.wait [#allocation4], 512  }
  0xc1   :  { %305 = vsyncadd [#allocation4], 4294966784 }
  0xc2   :  { %187 = vsyncpa [#allocation3], 1 }
  0xc3   :  { %188 = vsyncpa [#allocation4], 1 }

</bundles_post_ra>
